<compile_context>
chip_gen: v7x
topology: tpu7x:2x2x1
jax: 0.10.0
libtpu: 0.0.40
codegen_flags: <defaults>
</compile_context>

<pallas_src>
import functools
import math

import jax
import jax.numpy as jnp
from jax.experimental import pallas as pl
from jax.experimental.pallas import tpu as pltpu


# ----------------------------------------------------------------------------
# Fused kernel: conv-as-one-matmul + BatchNorm (batch stats) + ReLU.
# ----------------------------------------------------------------------------
def fused_conv_bn_relu_kernel(p_ref, w_ref, g_ref, b_ref, o_ref, *, eps):
    # p_ref: (Kpad, N*H*W)    im2col patch matrix (zero-padded K rows)
    # w_ref: (Cout, Kpad)     conv weights, (tap, ci)-major, zero-padded cols
    # g_ref: (Cout, 1)        BatchNorm gamma
    # b_ref: (Cout, 1)        BatchNorm beta
    # o_ref: (N, Cout, H*W)   output, lane-dense last dim
    n_images = o_ref.shape[0]
    hw = o_ref.shape[2]

    # Single MXU matmul: (Cout, K) @ (K, N*H*W) -> (Cout, N*H*W), f32 acc.
    acc = jnp.dot(w_ref[...], p_ref[...], preferred_element_type=jnp.float32)

    # BatchNorm2d (training-mode batch statistics): reduce over (N, H, W),
    # which is exactly the lane axis here.  Two-pass variance for accuracy.
    count = acc.shape[1]
    inv_count = 1.0 / count                                           # static
    mean = jnp.sum(acc, axis=1, keepdims=True) * inv_count            # (Cout,1)
    centered = acc - mean
    var = jnp.sum(centered * centered, axis=1, keepdims=True) * inv_count
    scale = g_ref[...] * jax.lax.rsqrt(var + eps)                     # EUP rsqrt

    # Normalize + ReLU (conv bias omitted: cancelled exactly by the mean).
    y = jnp.maximum(centered * scale + b_ref[...], 0.0)               # (Cout, N*H*W)

    # Per-image lane-dense stores; slice offsets are static multiples of 128.
    for n in range(n_images):
        o_ref[n] = y[:, n * hw:(n + 1) * hw]


@functools.partial(jax.jit, static_argnames=("eps",))
def cnn_forward(x_nchw, w, b, gamma, beta, eps=1e-5):
    """CNN.forward: DeformConv(≈3x3 conv, s=1, p=1) -> BatchNorm2d -> ReLU.

    x_nchw: (N, Cin, H, W) float32
    w:      (Cout, Cin, 3, 3)  PyTorch conv weight layout
    b:      (Cout,)            conv bias — unused: absorbed by batch-stat BN
    gamma, beta: (Cout,)       BatchNorm affine parameters
    Returns (N, Cout, H, W) float32.
    """
    del b  # conv bias cancels exactly under BatchNorm with batch statistics
    N, Cin, H, W = x_nchw.shape
    Cout = w.shape[0]
    K = 9 * Cin
    Kpad = ((K + 7) // 8) * 8          # sublane-align the contraction axis
    M = N * H * W

    # --- im2col in the wrapper (fused by XLA into one producer fusion) ------
    xpad = jnp.pad(x_nchw, ((0, 0), (0, 0), (1, 1), (1, 1)))
    taps = [xpad[:, :, dy:dy + H, dx:dx + W]            # each (N, Cin, H, W)
            for dy in range(3) for dx in range(3)]
    pat = jnp.stack(taps, axis=0)                       # (9, N, Cin, H, W)
    patches = jnp.transpose(pat, (0, 2, 1, 3, 4)).reshape(K, M)  # (9*Cin, M)
    patches = jnp.pad(patches, ((0, Kpad - K), (0, 0)))          # (Kpad, M)

    # Weight (Cout, Cin, 3, 3) -> (Cout, 9*Cin), (tap, ci)-major to match.
    w2 = jnp.transpose(w, (0, 2, 3, 1)).reshape(Cout, K)
    w2 = jnp.pad(w2, ((0, 0), (0, Kpad - K)))                    # (Cout, Kpad)
    g2 = gamma.reshape(Cout, 1)
    bt2 = beta.reshape(Cout, 1)

    out = pl.pallas_call(
        functools.partial(fused_conv_bn_relu_kernel, eps=eps),
        out_shape=jax.ShapeDtypeStruct((N, Cout, H * W), jnp.float32),
        grid=(1,),
        in_specs=[
            pl.BlockSpec((Kpad, M), lambda i: (0, 0)),
            pl.BlockSpec((Cout, Kpad), lambda i: (0, 0)),
            pl.BlockSpec((Cout, 1), lambda i: (0, 0)),
            pl.BlockSpec((Cout, 1), lambda i: (0, 0)),
        ],
        out_specs=pl.BlockSpec((N, Cout, H * W), lambda i: (0, 0, 0)),
        compiler_params=pltpu.CompilerParams(
            dimension_semantics=("arbitrary",)),
    )(patches, w2, g2, bt2)

    # (N, Cout, H*W) -> (N, Cout, H, W): trailing-dim split, free reshape.
    return out.reshape(N, Cout, H, W)


def _reference_forward(x, w, b, gamma, beta, eps=1e-5):
    """Pure-JAX reference: conv(3x3,s=1,p=1)+bias -> BN(batch stats) -> ReLU."""
    conv = jax.lax.conv_general_dilated(
        x, w, window_strides=(1, 1), padding=((1, 1), (1, 1)),
        dimension_numbers=("NCHW", "OIHW", "NCHW"))
    conv = conv + b.reshape(1, -1, 1, 1)
    mean = jnp.mean(conv, axis=(0, 2, 3), keepdims=True)
    var = jnp.mean((conv - mean) ** 2, axis=(0, 2, 3), keepdims=True)
    y = (conv - mean) * jax.lax.rsqrt(var + eps)
    y = y * gamma.reshape(1, -1, 1, 1) + beta.reshape(1, -1, 1, 1)
    return jnp.maximum(y, 0.0)


if __name__ == "__main__":
    # Small shapes consistent with the module's forward (only conv1 runs).
    N, Cin, H, W = 2, 4, 16, 16
    Cout = 32

    key = jax.random.PRNGKey(0)
    kx, kw, kb = jax.random.split(key, 3)

    x = jax.random.normal(kx, (N, Cin, H, W), dtype=jnp.float32)

    # Deterministic parameter init (Kaiming-uniform-like bound for conv).
    fan_in = Cin * 3 * 3
    bound = 1.0 / math.sqrt(fan_in)
    w = jax.random.uniform(kw, (Cout, Cin, 3, 3), jnp.float32, -bound, bound)
    b = jax.random.uniform(kb, (Cout,), jnp.float32, -bound, bound)
    gamma = jnp.ones((Cout,), jnp.float32)   # BatchNorm2d default weight
    beta = jnp.zeros((Cout,), jnp.float32)   # BatchNorm2d default bias

    out = cnn_forward(x, w, b, gamma, beta)
    out = jax.block_until_ready(out)

    assert out.shape == (N, Cout, H, W)
    assert out.dtype == jnp.float32

    ref = jax.block_until_ready(_reference_forward(x, w, b, gamma, beta))
    assert jnp.allclose(out, ref, atol=2e-3, rtol=2e-3)

    print("KERNEL_OK")
</pallas_src>

<mosaic_0001>
module attributes {stable_mosaic.version = 11 : i64} {
  func.func @fused_conv_bn_relu_kernel(%arg0: i32, %arg1: memref<40x512xf32, #tpu.memory_space<vmem>>, %arg2: memref<32x40xf32, #tpu.memory_space<vmem>>, %arg3: memref<32x1xf32, #tpu.memory_space<vmem>>, %arg4: memref<32x1xf32, #tpu.memory_space<vmem>>, %arg5: memref<2x32x256xf32, #tpu.memory_space<vmem>>) attributes {dimension_semantics = [#tpu.dimension_semantics<arbitrary>], iteration_bounds = array<i64: 1>, scalar_prefetch = 0 : i64, scratch_operands = 0 : i64, tpu.core_type = #tpu.core_type<tc>, window_params = [{pipeline_mode = #tpu.pipeline_mode<synchronous>, transform_indices = @transform_0, window_bounds = array<i64: 40, 512>}, {pipeline_mode = #tpu.pipeline_mode<synchronous>, transform_indices = @transform_1, window_bounds = array<i64: 32, 40>}, {pipeline_mode = #tpu.pipeline_mode<synchronous>, transform_indices = @transform_2, window_bounds = array<i64: 32, 1>}, {pipeline_mode = #tpu.pipeline_mode<synchronous>, transform_indices = @transform_3, window_bounds = array<i64: 32, 1>}, {pipeline_mode = #tpu.pipeline_mode<synchronous>, transform_indices = @transform_4, window_bounds = array<i64: 2, 32, 256>}]} {
    %c0 = arith.constant 0 : index
    %c0_0 = arith.constant 0 : index
    %0 = vector.load %arg2[%c0, %c0_0] : memref<32x40xf32, #tpu.memory_space<vmem>>, vector<32x40xf32>
    %c0_1 = arith.constant 0 : index
    %c0_2 = arith.constant 0 : index
    %1 = vector.load %arg1[%c0_1, %c0_2] : memref<40x512xf32, #tpu.memory_space<vmem>>, vector<40x512xf32>
    %cst = arith.constant dense<0.000000e+00> : vector<32x512xf32>
    %2 = tpu.matmul %0, %1, %cst {dimension_numbers = #tpu.dot_dimension_numbers<[1], [0], [0], [1], [0, 0, 1, 1], [], []>} : vector<32x40xf32>, vector<40x512xf32>, vector<32x512xf32> -> vector<32x512xf32>
    %cst_3 = arith.constant dense<0.000000e+00> : vector<32xf32>
    %3 = vector.multi_reduction <add>, %2, %cst_3 [1] : vector<32x512xf32> to vector<32xf32>
    %4 = vector.shape_cast %3 : vector<32xf32> to vector<32x1xf32>
    %cst_4 = arith.constant 0.001953125 : f32
    %5 = vector.broadcast %cst_4 : f32 to vector<32x1xf32>
    %6 = arith.mulf %4, %5 : vector<32x1xf32>
    %7 = vector.broadcast %6 : vector<32x1xf32> to vector<32x512xf32>
    %8 = arith.subf %2, %7 : vector<32x512xf32>
    %9 = arith.mulf %8, %8 : vector<32x512xf32>
    %cst_5 = arith.constant dense<0.000000e+00> : vector<32xf32>
    %10 = vector.multi_reduction <add>, %9, %cst_5 [1] : vector<32x512xf32> to vector<32xf32>
    %11 = vector.shape_cast %10 : vector<32xf32> to vector<32x1xf32>
    %cst_6 = arith.constant 0.001953125 : f32
    %12 = vector.broadcast %cst_6 : f32 to vector<32x1xf32>
    %13 = arith.mulf %11, %12 : vector<32x1xf32>
    %c0_7 = arith.constant 0 : index
    %c0_8 = arith.constant 0 : index
    %14 = vector.load %arg3[%c0_7, %c0_8] : memref<32x1xf32, #tpu.memory_space<vmem>>, vector<32x1xf32>
    %cst_9 = arith.constant 9.99999974E-6 : f32
    %15 = vector.broadcast %cst_9 : f32 to vector<32x1xf32>
    %16 = arith.addf %13, %15 : vector<32x1xf32>
    %17 = math.rsqrt %16 : vector<32x1xf32>
    %18 = arith.mulf %14, %17 : vector<32x1xf32>
    %19 = vector.broadcast %18 : vector<32x1xf32> to vector<32x512xf32>
    %20 = arith.mulf %8, %19 : vector<32x512xf32>
    %c0_10 = arith.constant 0 : index
    %c0_11 = arith.constant 0 : index
    %21 = vector.load %arg4[%c0_10, %c0_11] : memref<32x1xf32, #tpu.memory_space<vmem>>, vector<32x1xf32>
    %22 = vector.broadcast %21 : vector<32x1xf32> to vector<32x512xf32>
    %23 = arith.addf %20, %22 : vector<32x512xf32>
    %cst_12 = arith.constant 0.000000e+00 : f32
    %24 = vector.broadcast %cst_12 : f32 to vector<32x512xf32>
    %25 = arith.maximumf %23, %24 : vector<32x512xf32>
    %26 = vector.extract_strided_slice %25 {offsets = [0, 0], sizes = [32, 256], strides = [1, 1]} : vector<32x512xf32> to vector<32x256xf32>
    %c0_13 = arith.constant 0 : index
    %c0_14 = arith.constant 0 : index
    %c0_15 = arith.constant 0 : index
    %27 = vector.load %arg5[%c0_13, %c0_14, %c0_15] : memref<2x32x256xf32, #tpu.memory_space<vmem>>, vector<1x32x256xf32>
    %28 = vector.shape_cast %27 : vector<1x32x256xf32> to vector<32x256xf32>
    %29 = vector.shape_cast %26 : vector<32x256xf32> to vector<1x32x256xf32>
    tpu.vector_store %arg5[%c0_13, %c0_14, %c0_15], %29 {strides = array<i32>} : memref<2x32x256xf32, #tpu.memory_space<vmem>>, vector<1x32x256xf32>,
    %30 = vector.extract_strided_slice %25 {offsets = [0, 256], sizes = [32, 256], strides = [1, 1]} : vector<32x512xf32> to vector<32x256xf32>
    %c1 = arith.constant 1 : index
    %c0_16 = arith.constant 0 : index
    %c0_17 = arith.constant 0 : index
    %31 = vector.load %arg5[%c1, %c0_16, %c0_17] : memref<2x32x256xf32, #tpu.memory_space<vmem>>, vector<1x32x256xf32>
    %32 = vector.shape_cast %31 : vector<1x32x256xf32> to vector<32x256xf32>
    %33 = vector.shape_cast %30 : vector<32x256xf32> to vector<1x32x256xf32>
    tpu.vector_store %arg5[%c1, %c0_16, %c0_17], %33 {strides = array<i32>} : memref<2x32x256xf32, #tpu.memory_space<vmem>>, vector<1x32x256xf32>,
    return
  }
  func.func @transform_0(%arg0: i32) -> (i32, i32) {
    %c0_i32 = arith.constant 0 : i32
    %c0_i32_0 = arith.constant 0 : i32
    %c0_i32_1 = arith.constant 0 : i32
    return %c0_i32, %c0_i32_0 : i32, i32
  }
  func.func @transform_1(%arg0: i32) -> (i32, i32) {
    %c0_i32 = arith.constant 0 : i32
    %c0_i32_0 = arith.constant 0 : i32
    %c0_i32_1 = arith.constant 0 : i32
    return %c0_i32, %c0_i32_0 : i32, i32
  }
  func.func @transform_2(%arg0: i32) -> (i32, i32) {
    %c0_i32 = arith.constant 0 : i32
    %c0_i32_0 = arith.constant 0 : i32
    %c0_i32_1 = arith.constant 0 : i32
    return %c0_i32, %c0_i32_0 : i32, i32
  }
  func.func @transform_3(%arg0: i32) -> (i32, i32) {
    %c0_i32 = arith.constant 0 : i32
    %c0_i32_0 = arith.constant 0 : i32
    %c0_i32_1 = arith.constant 0 : i32
    return %c0_i32, %c0_i32_0 : i32, i32
  }
  func.func @transform_4(%arg0: i32) -> (i32, i32, i32) {
    %c0_i32 = arith.constant 0 : i32
    %c0_i32_0 = arith.constant 0 : i32
    %c0_i32_1 = arith.constant 0 : i32
    %c0_i32_2 = arith.constant 0 : i32
    return %c0_i32, %c0_i32_0, %c0_i32_1 : i32, i32, i32
  }
}

</mosaic_0001>

<bundles_post_ra>
// kernel: cnn_forward.1
= control target key start
LH: loop header
LB: loop body
LE: loop exit
PB: predicated region body
PF: predicated region fallthrough
CT: control target
= control target key end

     0   :  { %v485_v3 = vmov 0.0   ;;  %vm41_vm0 = vcmask 326656   ;;  %s744_s0 = inlined_call_operand.vmem [shape: f32[40,512], index: 0, kind: input, shape index: {}]   ;;  %s745_s1 = inlined_call_operand.vmem [shape: f32[32,40], index: 1, kind: input, shape index: {}]   ;;  %s746_s3 = inlined_call_operand.vmem [shape: f32[32,1], index: 3, kind: input, shape index: {}]   ;;  %s747_s2 = inlined_call_operand.vmem [shape: f32[32,1], index: 2, kind: input, shape index: {}]   ;;  %s748_s4 = inlined_call_operand.vmem [shape: f32[2,32,256], index: 4, kind: output, shape index: {}]  }
   0x1   :  { %v22_v0 = vld [vmem:[%s744_s0 + $0x8] sm:$0xff]  ;;  %v21_v2 = vld [vmem:[%s744_s0] sm:$0xff]  ;;  %118 = vmatprep.mubr.f32.mxu0 %v485_v3  ;;  %207 = vmatprep.mubr.f32.mxu1 %v485_v3  ;;  %v24_v6 = vld [vmem:[%s744_s0 + $0x18] sm:$0xff] }
   0x2   :  { %v26_v1 = vld [vmem:[%s744_s0 + $0x28] sm:$0xff]  ;;  %v25_v5 = vld [vmem:[%s744_s0 + $0x20] sm:$0xff]  ;;  %v28_v7 = vld [vmem:[%s744_s0 + $0x38] sm:$0xff] }
   0x3   :  { %v457_v4 = vpack.c.bf16 %v26_v1, %v22_v0  ;;  %v459_v8 = vpack.c.bf16 %v25_v5, %v21_v2  ;;  %v465_v9 = vpack.c.bf16 %v28_v7, %v24_v6  ;;  %v23_v10 = vld [vmem:[%s744_s0 + $0x10] sm:$0xff]  ;;  %v30_v12 = vld [vmem:[%s744_s0 + $0x48] sm:$0xff]  ;;  %v29_v15 = vld [vmem:[%s744_s0 + $0x40] sm:$0xff] }
   0x4   :  { %v27_v11 = vld [vmem:[%s744_s0 + $0x30] sm:$0xff]  ;;  %v34_v14 = vld [vmem:[%s744_s0 + $0x68] sm:$0xff]  ;;  %v33_v16 = vld [vmem:[%s744_s0 + $0x60] sm:$0xff] }
   0x5   :  { %458 = vmatprep.subr.bf16.mxu0 %v457_v4  ;;  %v467_v13 = vpack.c.bf16 %v27_v11, %v23_v10  ;;  %466 = vmatprep.subr.bf16.mxu1 %v465_v9  ;;  %v461_v17 = vpack.c.bf16 %v34_v14, %v30_v12  ;;  %v463_v18 = vpack.c.bf16 %v33_v16, %v29_v15  ;;  %v32_v19 = vld [vmem:[%s744_s0 + $0x58] sm:$0xff]  ;;  %v31_v21 = vld [vmem:[%s744_s0 + $0x50] sm:$0xff]  ;;  %v38_v25 = vld [vmem:[%s744_s0 + $0x88] sm:$0xff] }
   0x6   :  { %460 = vmatpush1.bf16.msra.mxu0 %v459_v8  ;;  %v36_v20 = vld [vmem:[%s744_s0 + $0x78] sm:$0xff]  ;;  %v35_v23 = vld [vmem:[%s744_s0 + $0x70] sm:$0xff]  ;;  %v37_v27 = vld [vmem:[%s744_s0 + $0x80] sm:$0xff] }
   0x7   :  { %468 = vmatpush1.bf16.msra.mxu1 %v467_v13  ;;  %v469_v22 = vpack.c.bf16 %v36_v20, %v32_v19  ;;  %462 = vmatprep.subr.bf16.mxu0 %v461_v17  ;;  %v471_v24 = vpack.c.bf16 %v35_v23, %v31_v21  ;;  %v40_v26 = vld [vmem:[%s744_s0 + $0x98] sm:$0xff]  ;;  %v17_v28 = vld [vmem:[%s745_s1] sm:$0xff]  ;;  %v39_v29 = vld [vmem:[%s744_s0 + $0x90] sm:$0xff] }
   0x8   :  { %v18_v30 = vld [vmem:[%s745_s1 + $0x8] sm:$0xff]  ;;  %v19_v31 = vld [vmem:[%s745_s1 + $0x10] sm:$0xff]  ;;  %v20_v32 = vld [vmem:[%s745_s1 + $0x18] sm:$0xff] }
   0x9   :  { %470 = vmatprep.subr.bf16.mxu1 %v469_v22 }
   0xa   :  { %464 = vmatpush1.bf16.msra.mxu0 %v463_v18 }
   0xb   :  { %472 = vmatpush1.bf16.msra.mxu1 %v471_v24  ;;  %62 = vmatprep.subr.mxu0 %v38_v25 }
   0xc   :  { %151 = vmatprep.subr.mxu1 %v40_v26 }
   0xe   :  { %63 = vmatpush1.msra.mxu0 %v37_v27 }
   0xf   :  { %441 = vmatmul.mubr.msk.f32.vlgmr.msra.gmra.mrb[0].mxu0 %vm41_vm0, %v17_v28  ;;  %152 = vmatpush1.msra.mxu1 %v39_v29 }
  0x10   :  { %445 = vmatmul.mubr.msk.f32.vlgmr.msra.gmra.mrb[0].mxu1 %vm41_vm0, %v17_v28  ;;  %124 = vmatprep.mubr.f32.mxu0 %v485_v3 }
  0x11   :  { %213 = vmatprep.mubr.f32.mxu1 %v485_v3 }
  0x13   :  { %442 = vmatmul.mubr.msk.f32.gmra.mrb[2].mxu0 %vm41_vm0, %v18_v30 }
  0x14   :  { %446 = vmatmul.mubr.msk.f32.gmra.mrb[2].mxu1 %vm41_vm0, %v18_v30  ;;  %130 = vmatprep.mubr.f32.mxu0 %v485_v3 }
  0x15   :  { %219 = vmatprep.mubr.f32.mxu1 %v485_v3 }
  0x17   :  { %443 = vmatmul.mubr.msk.f32.gmra.mrb[4].mxu0 %vm41_vm0, %v19_v31 }
  0x18   :  { %447 = vmatmul.mubr.msk.f32.gmra.mrb[4].mxu1 %vm41_vm0, %v19_v31  ;;  %136 = vmatprep.mubr.f32.mxu0 %v485_v3 }
  0x19   :  { %225 = vmatprep.mubr.f32.mxu1 %v485_v3 }
  0x1b   :  { %444 = vmatmul.mubr.msk.f32.gmra.mrb[6].mxu0 %vm41_vm0, %v20_v32 }
  0x1c   :  { %448 = vmatmul.mubr.msk.f32.gmra.mrb[6].mxu1 %vm41_vm0, %v20_v32 }
  0xe2   :  { %v120_v33 = vpop.f32.mrb[0].mxu0 }
  0xe3   :  { %v122_v34 = vpop.f32.mrb[1].mxu0  ;;  %v209_v35 = vpop.f32.mrb[0].mxu1 }
  0xe4   :  { %v232_v36 = vadd.f32 %v122_v34, %v120_v33  ;;  %v211_v37 = vpop.f32.mrb[1].mxu1 }
  0xe6   :  { %v233_v38 = vadd.f32 %v232_v36, %v209_v35  ;;  %v126_v39 = vpop.f32.mrb[2].mxu0 }
  0xe7   :  { %v128_v40 = vpop.f32.mrb[3].mxu0  ;;  %v215_v41 = vpop.f32.mrb[2].mxu1 }
  0xe8   :  { %v237_v42 = vadd.f32 %v128_v40, %v126_v39  ;;  %v217_v43 = vpop.f32.mrb[3].mxu1  ;;  %v234_v44 = vadd.f32 %v233_v38, %v211_v37 }
  0xea   :  { %v238_v45 = vadd.f32 %v237_v42, %v215_v41  ;;  %235 = vadd.xlane.f32.xlu0 %v234_v44  ;;  %v132_v46 = vpop.f32.mrb[4].mxu0 }
  0xeb   :  { %v134_v47 = vpop.f32.mrb[5].mxu0  ;;  %v221_v48 = vpop.f32.mrb[4].mxu1 }
  0xec   :  { %v242_v49 = vadd.f32 %v134_v47, %v132_v46  ;;  %v223_v50 = vpop.f32.mrb[5].mxu1  ;;  %v239_v51 = vadd.f32 %v238_v45, %v217_v43 }
  0xee   :  { %v243_v52 = vadd.f32 %v242_v49, %v221_v48  ;;  %240 = vadd.xlane.f32.xlu0 %v239_v51  ;;  %v138_v53 = vpop.f32.mrb[6].mxu0  ;;  %v486_v49 = vmov 0   ;;  %v365_v51 = vld [vmem:[%s746_s3 + $0x8] sm:$0xff] }
  0xef   :  { %v140_v54 = vpop.f32.mrb[7].mxu0  ;;  %v227_v55 = vpop.f32.mrb[6].mxu1  ;;  %476 = vset.pattern.permute.xlu1 %v486_v49  ;;  %475 = vset.pattern.permute.xlu0 %v486_v49 }
  0xf0   :  { %v247_v56 = vadd.f32 %v140_v54, %v138_v53  ;;  %v229_v57 = vpop.f32.mrb[7].mxu1  ;;  %v244_v58 = vadd.f32 %v243_v52, %v223_v50  ;;  %v366_v52 = vld [vmem:[%s746_s3 + $0x10] sm:$0xff] }
  0xf2   :  { %v248_v59 = vadd.f32 %v247_v56, %v227_v55  ;;  %245 = vadd.xlane.f32.xlu1 %v244_v58 }
  0xf4   :  { %v249_v60 = vadd.f32 %v248_v59, %v229_v57 }
  0xf6   :  { %250 = vadd.xlane.f32.xlu1 %v249_v60 }
 0x177   :  { %v236_v61 = vpop.xlane.xlu0 %235 }
 0x178   :  { %v252_v62 = vmul.f32 0.001953125, %v236_v61 }
 0x17a   :  { %v592_v63 = vsub.f32 %v120_v33, %v252_v62  ;;  %v594_v0 = vsub.f32 %v122_v34, %v252_v62  ;;  %v596_v1 = vsub.f32 %v209_v35, %v252_v62  ;;  %v598_v3 = vsub.f32 %v211_v37, %v252_v62 }
 0x17b   :  { %v241_v2 = vpop.xlane.xlu0 %240 }
 0x17c   :  { %v253_v4 = vmul.f32 0.001953125, %v241_v2  ;;  %v272_v5 = vmul.f32 %v592_v63, %v592_v63  ;;  %v273_v6 = vmul.f32 %v594_v0, %v594_v0  ;;  %v274_v7 = vmul.f32 %v596_v1, %v596_v1 }
 0x17d   :  { %v275_v13 = vmul.f32 %v598_v3, %v598_v3 }
 0x17e   :  { %v606_v8 = vsub.f32 %v126_v39, %v253_v4  ;;  %v608_v9 = vsub.f32 %v128_v40, %v253_v4  ;;  %v288_v10 = vadd.f32 %v273_v6, %v272_v5  ;;  %v610_v11 = vsub.f32 %v215_v41, %v253_v4 }
 0x17f   :  { %v246_v12 = vpop.xlane.xlu1 %245  ;;  %v614_v14 = vsub.f32 %v217_v43, %v253_v4  ;;  %v312_v4 = vld [vmem:[%s747_s2] sm:$0xff] }
 0x180   :  { %v254_v15 = vmul.f32 0.001953125, %v246_v12  ;;  %v289_v16 = vadd.f32 %v288_v10, %v274_v7  ;;  %v276_v17 = vmul.f32 %v606_v8, %v606_v8  ;;  %v277_v18 = vmul.f32 %v608_v9, %v608_v9  ;;  %v313_v10 = vld [vmem:[%s747_s2 + $0x8] sm:$0xff] }
 0x181   :  { %v278_v19 = vmul.f32 %v610_v11, %v610_v11  ;;  %v279_v25 = vmul.f32 %v614_v14, %v614_v14 }
 0x182   :  { %v622_v20 = vsub.f32 %v132_v46, %v254_v15  ;;  %v624_v21 = vsub.f32 %v134_v47, %v254_v15  ;;  %v290_v22 = vadd.f32 %v289_v16, %v275_v13  ;;  %v293_v23 = vadd.f32 %v277_v18, %v276_v17  ;;  %v315_v18 = vld [vmem:[%s747_s2 + $0x18] sm:$0xff] }
 0x183   :  { %v251_v24 = vpop.xlane.xlu1 %250  ;;  %v628_v26 = vsub.f32 %v221_v48, %v254_v15  ;;  %v630_v27 = vsub.f32 %v223_v50, %v254_v15  ;;  %v364_v50 = vld [vmem:[%s746_s3] sm:$0xff]  ;;  %v314_v15 = vld [vmem:[%s747_s2 + $0x10] sm:$0xff] }
 0x184   :  { %v255_v28 = vmul.f32 0.001953125, %v251_v24  ;;  %291 = vadd.xlane.f32.xlu0 %v290_v22  ;;  %v294_v29 = vadd.f32 %v293_v23, %v278_v19  ;;  %v280_v30 = vmul.f32 %v622_v20, %v622_v20  ;;  %v281_v31 = vmul.f32 %v624_v21, %v624_v21  ;;  %v367_v23 = vld [vmem:[%s746_s3 + $0x18] sm:$0xff] }
 0x185   :  { %v282_v32 = vmul.f32 %v628_v26, %v628_v26  ;;  %v283_v37 = vmul.f32 %v630_v27, %v630_v27 }
 0x186   :  { %v638_v33 = vsub.f32 %v138_v53, %v255_v28  ;;  %v640_v34 = vsub.f32 %v140_v54, %v255_v28  ;;  %v295_v35 = vadd.f32 %v294_v29, %v279_v25  ;;  %v298_v36 = vadd.f32 %v281_v31, %v280_v30 }
 0x187   :  { %v644_v38 = vsub.f32 %v227_v55, %v255_v28  ;;  %v646_v40 = vsub.f32 %v229_v57, %v255_v28 }
 0x188   :  { %296 = vadd.xlane.f32.xlu1 %v295_v35  ;;  %v299_v39 = vadd.f32 %v298_v36, %v282_v32  ;;  %v284_v41 = vmul.f32 %v638_v33, %v638_v33  ;;  %v285_v42 = vmul.f32 %v640_v34, %v640_v34 }
 0x189   :  { %v286_v44 = vmul.f32 %v644_v38, %v644_v38  ;;  %v287_v46 = vmul.f32 %v646_v40, %v646_v40 }
 0x18a   :  { %v300_v43 = vadd.f32 %v299_v39, %v283_v37  ;;  %v303_v45 = vadd.f32 %v285_v42, %v284_v41 }
 0x18c   :  { %301 = vadd.xlane.f32.xlu0 %v300_v43  ;;  %v304_v47 = vadd.f32 %v303_v45, %v286_v44 }
 0x18e   :  { %v305_v48 = vadd.f32 %v304_v47, %v287_v46 }
 0x190   :  { %306 = vadd.xlane.f32.xlu1 %v305_v48 }
 0x1a1   :  { %370 = vperm.xlu1 %476, %v364_v50  }
 0x1a5   :  { %375 = vperm.xlu1 %476, %v365_v51  }
 0x1a9   :  { %380 = vperm.xlu1 %476, %v366_v52  }
 0x211   :  { %v292_v53 = vpop.xlane.xlu0 %291 }
 0x212   :  { %v308_v54 = vmul.f32 0.001953125, %v292_v53 }
 0x214   :  { %v316_v55 = vadd.f32 1e-05, %v308_v54 }
 0x215   :  { %v297_v56 = vpop.xlane.xlu1 %296 }
 0x216   :  { %477 = vrsqrt.f32 %v316_v55  ;;  %v309_v57 = vmul.f32 0.001953125, %v297_v56 }
 0x218   :  { %v317_v58 = vadd.f32 1e-05, %v309_v57 }
 0x219   :  { %v302_v59 = vpop.xlane.xlu0 %301 }
 0x21a   :  { %479 = vrsqrt.f32 %v317_v58  ;;  %v310_v60 = vmul.f32 0.001953125, %v302_v59 }
 0x21c   :  { %v318_v61 = vadd.f32 1e-05, %v310_v60 }
 0x21d   :  { %v307_v62 = vpop.xlane.xlu1 %306 }
 0x21e   :  { %481 = vrsqrt.f32 %v318_v61  ;;  %v311_v2 = vmul.f32 0.001953125, %v307_v62 }
 0x220   :  { %v478_v5 = vpop.eup %477  ;;  %v319_v6 = vadd.f32 1e-05, %v311_v2 }
 0x221   :  { %v324_v7 = vmul.f32 %v478_v5, %v312_v4  ;;  %v371_v24 = vpop.permute.xlu1 %370 }
 0x222   :  { %483 = vrsqrt.f32 %v319_v6 }
 0x223   :  { %330 = vperm.xlu0 %475, %v324_v7  }
 0x224   :  { %v480_v12 = vpop.eup %479 }
 0x225   :  { %v325_v13 = vmul.f32 %v480_v12, %v313_v10  ;;  %v376_v25 = vpop.permute.xlu1 %375 }
 0x227   :  { %335 = vperm.xlu1 %476, %v325_v13  }
 0x228   :  { %v482_v16 = vpop.eup %481 }
 0x229   :  { %v326_v17 = vmul.f32 %v482_v16, %v314_v15  ;;  %v381_v28 = vpop.permute.xlu1 %380 }
 0x22b   :  { %340 = vperm.xlu1 %476, %v326_v17  }
 0x22c   :  { %v484_v19 = vpop.eup %483 }
 0x22d   :  { %v327_v22 = vmul.f32 %v484_v19, %v315_v18 }
 0x22f   :  { %345 = vperm.xlu1 %476, %v327_v22  }
 0x233   :  { %385 = vperm.xlu1 %476, %v367_v23  }
 0x2a2   :  { %v331_v29 = vpop.permute.xlu0 %330 }
 0x2a3   :  { %v348_v30 = vmul.f32 %v331_v29, %v592_v63  ;;  %v349_v31 = vmul.f32 %v331_v29, %v594_v0  ;;  %v350_v32 = vmul.f32 %v331_v29, %v596_v1  ;;  %v351_v35 = vmul.f32 %v331_v29, %v598_v3 }
 0x2a5   :  { %v388_v36 = vadd.f32 %v371_v24, %v348_v30  ;;  %v389_v37 = vadd.f32 %v371_v24, %v349_v31  ;;  %v390_v39 = vadd.f32 %v371_v24, %v350_v32  ;;  %v391_v41 = vadd.f32 %v371_v24, %v351_v35 }
 0x2a6   :  { %v336_v42 = vpop.permute.xlu1 %335 }
 0x2a7   :  { %v404_v43 = vmax.f32 %v388_v36, 0.0  ;;  %v405_v44 = vmax.f32 %v389_v37, 0.0  ;;  %v406_v45 = vmax.f32 %v390_v39, 0.0  ;;  %v407_v46 = vmax.f32 %v391_v41, 0.0 }
 0x2a8   :  { %v352_v47 = vmul.f32 %v336_v42, %v606_v8  ;;  %v353_v48 = vmul.f32 %v336_v42, %v608_v9  ;;  %v354_v63 = vmul.f32 %v336_v42, %v610_v11  ;;  %v355_v0 = vmul.f32 %v336_v42, %v614_v14 }
 0x2a9   :  { %420 = vst [vmem:[%s748_s4] sm:$0xff] %v404_v43  ;;  %421 = vst [vmem:[%s748_s4 + $0x8] sm:$0xff] %v405_v44 }
 0x2aa   :  { %449 = vst [vmem:[%s748_s4 + $0x40] sm:$0xff] %v406_v45  ;;  %450 = vst [vmem:[%s748_s4 + $0x48] sm:$0xff] %v407_v46  ;;  %v392_v1 = vadd.f32 %v376_v25, %v352_v47  ;;  %v393_v3 = vadd.f32 %v376_v25, %v353_v48  ;;  %v394_v8 = vadd.f32 %v376_v25, %v354_v63  ;;  %v341_v11 = vpop.permute.xlu1 %340 }
 0x2ab   :  { %v395_v9 = vadd.f32 %v376_v25, %v355_v0  ;;  %v356_v14 = vmul.f32 %v341_v11, %v622_v20  ;;  %v357_v49 = vmul.f32 %v341_v11, %v624_v21  ;;  %v358_v50 = vmul.f32 %v341_v11, %v628_v26 }
 0x2ac   :  { %v359_v51 = vmul.f32 %v341_v11, %v630_v27  ;;  %v408_v52 = vmax.f32 %v392_v1, 0.0  ;;  %v409_v53 = vmax.f32 %v393_v3, 0.0  ;;  %v410_v54 = vmax.f32 %v394_v8, 0.0 }
 0x2ad   :  { %v411_v55 = vmax.f32 %v395_v9, 0.0  ;;  %v396_v56 = vadd.f32 %v381_v28, %v356_v14  ;;  %v397_v57 = vadd.f32 %v381_v28, %v357_v49  ;;  %v398_v58 = vadd.f32 %v381_v28, %v358_v50 }
 0x2ae   :  { %v399_v59 = vadd.f32 %v381_v28, %v359_v51  ;;  %422 = vst [vmem:[%s748_s4 + $0x10] sm:$0xff] %v408_v52  ;;  %423 = vst [vmem:[%s748_s4 + $0x18] sm:$0xff] %v409_v53  ;;  %v346_v20 = vpop.permute.xlu1 %345 }
 0x2af   :  { %451 = vst [vmem:[%s748_s4 + $0x50] sm:$0xff] %v410_v54  ;;  %452 = vst [vmem:[%s748_s4 + $0x58] sm:$0xff] %v411_v55  ;;  %v412_v21 = vmax.f32 %v396_v56, 0.0  ;;  %v413_v26 = vmax.f32 %v397_v57, 0.0  ;;  %v414_v27 = vmax.f32 %v398_v58, 0.0  ;;  %v360_v61 = vmul.f32 %v346_v20, %v638_v33 }
 0x2b0   :  { %v415_v60 = vmax.f32 %v399_v59, 0.0  ;;  %v361_v62 = vmul.f32 %v346_v20, %v640_v34  ;;  %v362_v2 = vmul.f32 %v346_v20, %v644_v38  ;;  %v363_v4 = vmul.f32 %v346_v20, %v646_v40 }
 0x2b1   :  { %424 = vst [vmem:[%s748_s4 + $0x20] sm:$0xff] %v412_v21  ;;  %425 = vst [vmem:[%s748_s4 + $0x28] sm:$0xff] %v413_v26 }
 0x2b2   :  { %453 = vst [vmem:[%s748_s4 + $0x60] sm:$0xff] %v414_v27  ;;  %454 = vst [vmem:[%s748_s4 + $0x68] sm:$0xff] %v415_v60  ;;  %v386_v5 = vpop.permute.xlu1 %385 }
 0x2b3   :  { %v400_v6 = vadd.f32 %v386_v5, %v360_v61  ;;  %v401_v7 = vadd.f32 %v386_v5, %v361_v62  ;;  %v402_v10 = vadd.f32 %v386_v5, %v362_v2  ;;  %v403_v12 = vadd.f32 %v386_v5, %v363_v4 }
 0x2b5   :  { %v416_v13 = vmax.f32 %v400_v6, 0.0  ;;  %v417_v15 = vmax.f32 %v401_v7, 0.0  ;;  %v418_v16 = vmax.f32 %v402_v10, 0.0  ;;  %v419_v17 = vmax.f32 %v403_v12, 0.0 }
 0x2b7   :  { %426 = vst [vmem:[%s748_s4 + $0x30] sm:$0xff] %v416_v13  ;;  %427 = vst [vmem:[%s748_s4 + $0x38] sm:$0xff] %v417_v15 }
 0x2b8   :  { %455 = vst [vmem:[%s748_s4 + $0x70] sm:$0xff] %v418_v16  ;;  %456 = vst [vmem:[%s748_s4 + $0x78] sm:$0xff] %v419_v17 }

</bundles_post_ra>
